<compile_context>
chip_gen: v5e
topology: v5e:2x2
jax: 0.10.0
libtpu: 0.0.40
codegen_flags: <defaults>
</compile_context>

<pallas_src>
import jax
import jax.numpy as jnp
from jax.experimental import pallas as pl
from jax.experimental.pallas import tpu as pltpu


def conductor_kernel(z_ref, wfcT_ref, bfc_ref, whh0T_ref, b0_ref,
                     w1T_ref, b1_ref, out_ref):
    """One batch tile of the full forward pass.

    z_ref     : (TB, L)    latent input tile
    wfcT_ref  : (L, 4H)    fc_init weight, transposed (bf16)
    bfc_ref   : (1, 4H)    fc_init bias (f32)
    whh0T_ref : (H, 4H)    LSTM layer-0 hidden->gates weight, transposed (bf16)
    b0_ref    : (1, 4H)    bias_ih_l0 + bias_hh_l0 (f32)
    w1T_ref   : (2H, 4H)   concat([W_ih_l1^T, W_hh_l1^T]) (bf16)
    b1_ref    : (1, 4H)    bias_ih_l1 + bias_hh_l1 (f32)
    out_ref   : (TB, 2H)   last-layer hidden, t=0 in [:, :H], t=1 in [:, H:2H]
    """
    H = whh0T_ref.shape[0]

    z = z_ref[...].astype(jnp.float32)
    wfcT = wfcT_ref[...].astype(jnp.float32)
    bfc = bfc_ref[...].astype(jnp.float32)
    whh0T = whh0T_ref[...].astype(jnp.float32)
    b0 = b0_ref[...].astype(jnp.float32)
    w1T = w1T_ref[...].astype(jnp.float32)
    b1 = b1_ref[...].astype(jnp.float32)

    # fc_init + tanh
    zt = jnp.tanh(jnp.dot(z, wfcT, preferred_element_type=jnp.float32) + bfc)

    # Split into initial per-layer hidden / cell states (PyTorch layout).
    h0 = zt[:, 0 * H:1 * H]   # layer 0 hidden
    h1 = zt[:, 1 * H:2 * H]   # layer 1 hidden
    c0 = zt[:, 2 * H:3 * H]   # layer 0 cell
    c1 = zt[:, 3 * H:4 * H]   # layer 1 cell

    def gates_to_hc(gates, c):
        # Full-width activations on the whole (TB, 4H) vreg, slice afterwards.
        sig = jax.nn.sigmoid(gates)
        th = jnp.tanh(gates)
        i = sig[:, 0 * H:1 * H]
        f = sig[:, 1 * H:2 * H]
        g = th[:, 2 * H:3 * H]
        o = sig[:, 3 * H:4 * H]
        c_new = f * c + i * g
        h_new = o * jnp.tanh(c_new)
        return h_new, c_new

    outs = []
    for _ in range(2):  # seq_len = 2, statically unrolled
        # layer 0: LSTM input is all zeros -> only hidden matmul + biases.
        g0 = jnp.dot(h0, whh0T, preferred_element_type=jnp.float32) + b0
        h0, c0 = gates_to_hc(g0, c0)
        # layer 1: fused input+hidden matmul over concat([h0_new, h1]).
        x1 = jnp.concatenate([h0, h1], axis=-1)                      # (TB, 2H)
        g1 = jnp.dot(x1, w1T, preferred_element_type=jnp.float32) + b1
        h1, c1 = gates_to_hc(g1, c1)
        outs.append(h1)

    # Single lane-dense store of the whole (TB, 2H) output tile.
    out_ref[...] = jnp.concatenate(outs, axis=-1).astype(out_ref.dtype)


def conductor_rnn_forward(z, params, *, tile_b_max=256):
    """z: (1, B, latent_dim)  ->  output: (B, 2, hidden_dim)  (batch_first)."""
    assert z.ndim == 3 and z.shape[0] == 1
    _, B, L = z.shape
    H = params["whh0T"].shape[0]
    z2d = z[0]  # (B, L)

    # Batch tiling: pad to a multiple of 8 sublanes; cap the tile so the
    # per-tile VMEM footprint stays small (re-derive tile_b_max for big H on
    # v7x, which has 64 MiB physical / 32 MiB scoped-default VMEM).
    pad8 = -(-B // 8) * 8
    tile_b = min(pad8, tile_b_max)
    Bp = -(-pad8 // tile_b) * tile_b
    if Bp != B:
        z2d = jnp.pad(z2d, ((0, Bp - B), (0, 0)))

    def full_spec(a):
        # Whole-array block with a constant index_map: weights / biases stay
        # VMEM-resident across all batch-grid iterations.
        return pl.BlockSpec(a.shape, lambda i: (0, 0))

    out = pl.pallas_call(
        conductor_kernel,
        out_shape=jax.ShapeDtypeStruct((Bp, 2 * H), jnp.float32),
        grid=(Bp // tile_b,),
        in_specs=[
            pl.BlockSpec((tile_b, L), lambda i: (i, 0)),   # z: tiled over batch
            full_spec(params["wfcT"]),
            full_spec(params["bfc"]),
            full_spec(params["whh0T"]),
            full_spec(params["b0"]),
            full_spec(params["w1T"]),
            full_spec(params["b1"]),
        ],
        out_specs=pl.BlockSpec((tile_b, 2 * H), lambda i: (i, 0)),
        compiler_params=pltpu.CompilerParams(
            dimension_semantics=("parallel",)),
    )(z2d,
      params["wfcT"], params["bfc"],
      params["whh0T"], params["b0"],
      params["w1T"], params["b1"])

    # (B, 2H) with timesteps packed along lanes -> free contiguous reshape to
    # PyTorch's batch_first (B, 2, H).  No transpose, no extra HBM round trip.
    return out[:B].reshape(B, 2, H)


def init_params(key, latent_dim, hidden_dim):
    """Deterministic synthetic parameters with PyTorch-like shapes."""
    L, H = latent_dim, hidden_dim
    ks = jax.random.split(key, 9)
    u = lambda k, shape, s: jax.random.uniform(k, shape, jnp.float32, -s, s)

    # fc_init: Linear(L, 4H): weight (4H, L), bias (4H)
    w_fc = u(ks[0], (4 * H, L), 1.0 / (L ** 0.5))
    b_fc = u(ks[1], (4 * H,), 1.0 / (L ** 0.5))
    # LSTM layer 0: weight_ih_l0 (4H, L) is multiplied by a zero input -> only
    # its bias matters; weight_hh_l0 (4H, H).
    w_hh0 = u(ks[2], (4 * H, H), 1.0 / (H ** 0.5))
    b_ih0 = u(ks[3], (4 * H,), 1.0 / (H ** 0.5))
    b_hh0 = u(ks[4], (4 * H,), 1.0 / (H ** 0.5))
    # LSTM layer 1: weight_ih_l1 (4H, H), weight_hh_l1 (4H, H)
    w_ih1 = u(ks[5], (4 * H, H), 1.0 / (H ** 0.5))
    w_hh1 = u(ks[6], (4 * H, H), 1.0 / (H ** 0.5))
    b_ih1 = u(ks[7], (4 * H,), 1.0 / (H ** 0.5))
    b_hh1 = u(ks[8], (4 * H,), 1.0 / (H ** 0.5))
    # TODO(synk): self.linear (Linear(H, output_dim)) is never used in
    # forward(); intentionally omitted.

    # Weight matrices stored in bf16 (halves weight DMA); biases stay f32.
    wih1T = w_ih1.T.astype(jnp.bfloat16)             # (H, 4H)
    whh1T = w_hh1.T.astype(jnp.bfloat16)             # (H, 4H)
    return {
        "wfcT": w_fc.T.astype(jnp.bfloat16),          # (L, 4H)
        "bfc": b_fc.reshape(1, 4 * H),                # (1, 4H) f32
        "whh0T": w_hh0.T.astype(jnp.bfloat16),        # (H, 4H)
        "b0": (b_ih0 + b_hh0).reshape(1, 4 * H),      # (1, 4H) f32
        "wih1T": wih1T,                               # reference only
        "whh1T": whh1T,                               # reference only
        "w1T": jnp.concatenate([wih1T, whh1T], 0),    # (2H, 4H) fused, kernel
        "b1": (b_ih1 + b_hh1).reshape(1, 4 * H),      # (1, 4H) f32
    }


def reference_forward(z, params):
    """Pure-JAX reference mirroring the PyTorch semantics (un-fused weights)."""
    H = params["whh0T"].shape[0]
    f32 = lambda a: a.astype(jnp.float32)
    zt = jnp.tanh(z[0] @ f32(params["wfcT"]) + params["bfc"])
    h0, h1 = zt[:, :H], zt[:, H:2 * H]
    c0, c1 = zt[:, 2 * H:3 * H], zt[:, 3 * H:]

    def cell(x_contrib, h, c, whhT, b):
        g = x_contrib + h @ whhT + b
        i = jax.nn.sigmoid(g[:, :H])
        f = jax.nn.sigmoid(g[:, H:2 * H])
        gg = jnp.tanh(g[:, 2 * H:3 * H])
        o = jax.nn.sigmoid(g[:, 3 * H:])
        c_new = f * c + i * gg
        return o * jnp.tanh(c_new), c_new

    outs = []
    for _ in range(2):
        h0, c0 = cell(0.0, h0, c0, f32(params["whh0T"]), params["b0"])
        x1 = h0 @ f32(params["wih1T"])
        h1, c1 = cell(x1, h1, c1, f32(params["whh1T"]), params["b1"])
        outs.append(h1)
    return jnp.stack(outs, axis=1)  # (B, 2, H)


if __name__ == "__main__":
    latent_dim = 32
    hidden_dim = 32
    batch = 8

    key = jax.random.PRNGKey(0)
    k_param, k_z = jax.random.split(key)
    params = init_params(k_param, latent_dim, hidden_dim)

    # z has shape (1, B, latent_dim): z.size(1) is the batch; the split h/c
    # states concatenated along dim 0 give the (num_layers=2, B, H) state.
    z = jax.random.normal(k_z, (1, batch, latent_dim), jnp.float32)

    out = conductor_rnn_forward(z, params)
    out = jax.block_until_ready(out)

    ref = reference_forward(z, params)
    assert out.shape == (batch, 2, hidden_dim)
    assert bool(jnp.allclose(out, ref, atol=1e-4, rtol=1e-4)), \
        float(jnp.max(jnp.abs(out - ref)))

    print("KERNEL_OK")
</pallas_src>

<mosaic_0001>
module attributes {stable_mosaic.version = 11 : i64} {
  func.func @conductor_kernel(%arg0: i32, %arg1: memref<8x32xf32, #tpu.memory_space<vmem>>, %arg2: memref<32x128xbf16, #tpu.memory_space<vmem>>, %arg3: memref<1x128xf32, #tpu.memory_space<vmem>>, %arg4: memref<32x128xbf16, #tpu.memory_space<vmem>>, %arg5: memref<1x128xf32, #tpu.memory_space<vmem>>, %arg6: memref<64x128xbf16, #tpu.memory_space<vmem>>, %arg7: memref<1x128xf32, #tpu.memory_space<vmem>>, %arg8: memref<8x64xf32, #tpu.memory_space<vmem>>) attributes {dimension_semantics = [#tpu.dimension_semantics<parallel>], iteration_bounds = array<i64: 1>, scalar_prefetch = 0 : i64, scratch_operands = 0 : i64, tpu.core_type = #tpu.core_type<tc>, window_params = [{transform_indices = @transform_0, window_bounds = array<i64: 8, 32>}, {pipeline_mode = #tpu.pipeline_mode<synchronous>, transform_indices = @transform_1, window_bounds = array<i64: 32, 128>}, {pipeline_mode = #tpu.pipeline_mode<synchronous>, transform_indices = @transform_2, window_bounds = array<i64: 1, 128>}, {pipeline_mode = #tpu.pipeline_mode<synchronous>, transform_indices = @transform_3, window_bounds = array<i64: 32, 128>}, {pipeline_mode = #tpu.pipeline_mode<synchronous>, transform_indices = @transform_4, window_bounds = array<i64: 1, 128>}, {pipeline_mode = #tpu.pipeline_mode<synchronous>, transform_indices = @transform_5, window_bounds = array<i64: 64, 128>}, {pipeline_mode = #tpu.pipeline_mode<synchronous>, transform_indices = @transform_6, window_bounds = array<i64: 1, 128>}, {transform_indices = @transform_7, window_bounds = array<i64: 8, 64>}]} {
    %c0 = arith.constant 0 : index
    %c0_0 = arith.constant 0 : index
    %0 = vector.load %arg1[%c0, %c0_0] : memref<8x32xf32, #tpu.memory_space<vmem>>, vector<8x32xf32>
    %c0_1 = arith.constant 0 : index
    %c0_2 = arith.constant 0 : index
    %1 = vector.load %arg2[%c0_1, %c0_2] : memref<32x128xbf16, #tpu.memory_space<vmem>>, vector<32x128xbf16>
    %2 = arith.extf %1 : vector<32x128xbf16> to vector<32x128xf32>
    %c0_3 = arith.constant 0 : index
    %c0_4 = arith.constant 0 : index
    %3 = vector.load %arg3[%c0_3, %c0_4] : memref<1x128xf32, #tpu.memory_space<vmem>>, vector<1x128xf32>
    %c0_5 = arith.constant 0 : index
    %c0_6 = arith.constant 0 : index
    %4 = vector.load %arg4[%c0_5, %c0_6] : memref<32x128xbf16, #tpu.memory_space<vmem>>, vector<32x128xbf16>
    %5 = arith.extf %4 : vector<32x128xbf16> to vector<32x128xf32>
    %c0_7 = arith.constant 0 : index
    %c0_8 = arith.constant 0 : index
    %6 = vector.load %arg5[%c0_7, %c0_8] : memref<1x128xf32, #tpu.memory_space<vmem>>, vector<1x128xf32>
    %c0_9 = arith.constant 0 : index
    %c0_10 = arith.constant 0 : index
    %7 = vector.load %arg6[%c0_9, %c0_10] : memref<64x128xbf16, #tpu.memory_space<vmem>>, vector<64x128xbf16>
    %8 = arith.extf %7 : vector<64x128xbf16> to vector<64x128xf32>
    %c0_11 = arith.constant 0 : index
    %c0_12 = arith.constant 0 : index
    %9 = vector.load %arg7[%c0_11, %c0_12] : memref<1x128xf32, #tpu.memory_space<vmem>>, vector<1x128xf32>
    %cst = arith.constant dense<0.000000e+00> : vector<8x128xf32>
    %10 = tpu.matmul %0, %2, %cst {dimension_numbers = #tpu.dot_dimension_numbers<[1], [0], [0], [1], [0, 0, 1, 1], [], []>} : vector<8x32xf32>, vector<32x128xf32>, vector<8x128xf32> -> vector<8x128xf32>
    %11 = vector.broadcast %3 : vector<1x128xf32> to vector<8x128xf32>
    %12 = arith.addf %10, %11 : vector<8x128xf32>
    %13 = math.tanh %12 : vector<8x128xf32>
    %14 = vector.extract_strided_slice %13 {offsets = [0, 0], sizes = [8, 32], strides = [1, 1]} : vector<8x128xf32> to vector<8x32xf32>
    %15 = vector.extract_strided_slice %13 {offsets = [0, 32], sizes = [8, 32], strides = [1, 1]} : vector<8x128xf32> to vector<8x32xf32>
    %16 = vector.extract_strided_slice %13 {offsets = [0, 64], sizes = [8, 32], strides = [1, 1]} : vector<8x128xf32> to vector<8x32xf32>
    %17 = vector.extract_strided_slice %13 {offsets = [0, 96], sizes = [8, 32], strides = [1, 1]} : vector<8x128xf32> to vector<8x32xf32>
    %cst_13 = arith.constant dense<0.000000e+00> : vector<8x128xf32>
    %18 = tpu.matmul %14, %5, %cst_13 {dimension_numbers = #tpu.dot_dimension_numbers<[1], [0], [0], [1], [0, 0, 1, 1], [], []>} : vector<8x32xf32>, vector<32x128xf32>, vector<8x128xf32> -> vector<8x128xf32>
    %19 = vector.broadcast %6 : vector<1x128xf32> to vector<8x128xf32>
    %20 = arith.addf %18, %19 : vector<8x128xf32>
    %21 = arith.negf %20 : vector<8x128xf32>
    %22 = math.exp %21 : vector<8x128xf32>
    %cst_14 = arith.constant 1.000000e+00 : f32
    %23 = vector.broadcast %cst_14 : f32 to vector<8x128xf32>
    %24 = arith.addf %23, %22 : vector<8x128xf32>
    %25 = arith.divf %23, %24 : vector<8x128xf32>
    %26 = math.tanh %20 : vector<8x128xf32>
    %27 = vector.extract_strided_slice %25 {offsets = [0, 0], sizes = [8, 32], strides = [1, 1]} : vector<8x128xf32> to vector<8x32xf32>
    %28 = vector.extract_strided_slice %25 {offsets = [0, 32], sizes = [8, 32], strides = [1, 1]} : vector<8x128xf32> to vector<8x32xf32>
    %29 = vector.extract_strided_slice %26 {offsets = [0, 64], sizes = [8, 32], strides = [1, 1]} : vector<8x128xf32> to vector<8x32xf32>
    %30 = vector.extract_strided_slice %25 {offsets = [0, 96], sizes = [8, 32], strides = [1, 1]} : vector<8x128xf32> to vector<8x32xf32>
    %31 = arith.mulf %28, %16 : vector<8x32xf32>
    %32 = arith.mulf %27, %29 : vector<8x32xf32>
    %33 = arith.addf %31, %32 : vector<8x32xf32>
    %34 = math.tanh %33 : vector<8x32xf32>
    %35 = arith.mulf %30, %34 : vector<8x32xf32>
    %36 = tpu.concatenate %35, %15 in 1 : vector<8x32xf32>, vector<8x32xf32> -> vector<8x64xf32>
    %cst_15 = arith.constant dense<0.000000e+00> : vector<8x128xf32>
    %37 = tpu.matmul %36, %8, %cst_15 {dimension_numbers = #tpu.dot_dimension_numbers<[1], [0], [0], [1], [0, 0, 1, 1], [], []>} : vector<8x64xf32>, vector<64x128xf32>, vector<8x128xf32> -> vector<8x128xf32>
    %38 = vector.broadcast %9 : vector<1x128xf32> to vector<8x128xf32>
    %39 = arith.addf %37, %38 : vector<8x128xf32>
    %40 = arith.negf %39 : vector<8x128xf32>
    %41 = math.exp %40 : vector<8x128xf32>
    %cst_16 = arith.constant 1.000000e+00 : f32
    %42 = vector.broadcast %cst_16 : f32 to vector<8x128xf32>
    %43 = arith.addf %42, %41 : vector<8x128xf32>
    %44 = arith.divf %42, %43 : vector<8x128xf32>
    %45 = math.tanh %39 : vector<8x128xf32>
    %46 = vector.extract_strided_slice %44 {offsets = [0, 0], sizes = [8, 32], strides = [1, 1]} : vector<8x128xf32> to vector<8x32xf32>
    %47 = vector.extract_strided_slice %44 {offsets = [0, 32], sizes = [8, 32], strides = [1, 1]} : vector<8x128xf32> to vector<8x32xf32>
    %48 = vector.extract_strided_slice %45 {offsets = [0, 64], sizes = [8, 32], strides = [1, 1]} : vector<8x128xf32> to vector<8x32xf32>
    %49 = vector.extract_strided_slice %44 {offsets = [0, 96], sizes = [8, 32], strides = [1, 1]} : vector<8x128xf32> to vector<8x32xf32>
    %50 = arith.mulf %47, %17 : vector<8x32xf32>
    %51 = arith.mulf %46, %48 : vector<8x32xf32>
    %52 = arith.addf %50, %51 : vector<8x32xf32>
    %53 = math.tanh %52 : vector<8x32xf32>
    %54 = arith.mulf %49, %53 : vector<8x32xf32>
    %cst_17 = arith.constant dense<0.000000e+00> : vector<8x128xf32>
    %55 = tpu.matmul %35, %5, %cst_17 {dimension_numbers = #tpu.dot_dimension_numbers<[1], [0], [0], [1], [0, 0, 1, 1], [], []>} : vector<8x32xf32>, vector<32x128xf32>, vector<8x128xf32> -> vector<8x128xf32>
    %56 = vector.broadcast %6 : vector<1x128xf32> to vector<8x128xf32>
    %57 = arith.addf %55, %56 : vector<8x128xf32>
    %58 = arith.negf %57 : vector<8x128xf32>
    %59 = math.exp %58 : vector<8x128xf32>
    %cst_18 = arith.constant 1.000000e+00 : f32
    %60 = vector.broadcast %cst_18 : f32 to vector<8x128xf32>
    %61 = arith.addf %60, %59 : vector<8x128xf32>
    %62 = arith.divf %60, %61 : vector<8x128xf32>
    %63 = math.tanh %57 : vector<8x128xf32>
    %64 = vector.extract_strided_slice %62 {offsets = [0, 0], sizes = [8, 32], strides = [1, 1]} : vector<8x128xf32> to vector<8x32xf32>
    %65 = vector.extract_strided_slice %62 {offsets = [0, 32], sizes = [8, 32], strides = [1, 1]} : vector<8x128xf32> to vector<8x32xf32>
    %66 = vector.extract_strided_slice %63 {offsets = [0, 64], sizes = [8, 32], strides = [1, 1]} : vector<8x128xf32> to vector<8x32xf32>
    %67 = vector.extract_strided_slice %62 {offsets = [0, 96], sizes = [8, 32], strides = [1, 1]} : vector<8x128xf32> to vector<8x32xf32>
    %68 = arith.mulf %65, %33 : vector<8x32xf32>
    %69 = arith.mulf %64, %66 : vector<8x32xf32>
    %70 = arith.addf %68, %69 : vector<8x32xf32>
    %71 = math.tanh %70 : vector<8x32xf32>
    %72 = arith.mulf %67, %71 : vector<8x32xf32>
    %73 = tpu.concatenate %72, %54 in 1 : vector<8x32xf32>, vector<8x32xf32> -> vector<8x64xf32>
    %cst_19 = arith.constant dense<0.000000e+00> : vector<8x128xf32>
    %74 = tpu.matmul %73, %8, %cst_19 {dimension_numbers = #tpu.dot_dimension_numbers<[1], [0], [0], [1], [0, 0, 1, 1], [], []>} : vector<8x64xf32>, vector<64x128xf32>, vector<8x128xf32> -> vector<8x128xf32>
    %75 = vector.broadcast %9 : vector<1x128xf32> to vector<8x128xf32>
    %76 = arith.addf %74, %75 : vector<8x128xf32>
    %77 = arith.negf %76 : vector<8x128xf32>
    %78 = math.exp %77 : vector<8x128xf32>
    %cst_20 = arith.constant 1.000000e+00 : f32
    %79 = vector.broadcast %cst_20 : f32 to vector<8x128xf32>
    %80 = arith.addf %79, %78 : vector<8x128xf32>
    %81 = arith.divf %79, %80 : vector<8x128xf32>
    %82 = math.tanh %76 : vector<8x128xf32>
    %83 = vector.extract_strided_slice %81 {offsets = [0, 0], sizes = [8, 32], strides = [1, 1]} : vector<8x128xf32> to vector<8x32xf32>
    %84 = vector.extract_strided_slice %81 {offsets = [0, 32], sizes = [8, 32], strides = [1, 1]} : vector<8x128xf32> to vector<8x32xf32>
    %85 = vector.extract_strided_slice %82 {offsets = [0, 64], sizes = [8, 32], strides = [1, 1]} : vector<8x128xf32> to vector<8x32xf32>
    %86 = vector.extract_strided_slice %81 {offsets = [0, 96], sizes = [8, 32], strides = [1, 1]} : vector<8x128xf32> to vector<8x32xf32>
    %87 = arith.mulf %84, %52 : vector<8x32xf32>
    %88 = arith.mulf %83, %85 : vector<8x32xf32>
    %89 = arith.addf %87, %88 : vector<8x32xf32>
    %90 = math.tanh %89 : vector<8x32xf32>
    %91 = arith.mulf %86, %90 : vector<8x32xf32>
    %92 = tpu.concatenate %54, %91 in 1 : vector<8x32xf32>, vector<8x32xf32> -> vector<8x64xf32>
    %c0_21 = arith.constant 0 : index
    %c0_22 = arith.constant 0 : index
    %93 = vector.load %arg8[%c0_21, %c0_22] : memref<8x64xf32, #tpu.memory_space<vmem>>, vector<8x64xf32>
    tpu.vector_store %arg8[%c0_21, %c0_22], %92 {strides = array<i32>} : memref<8x64xf32, #tpu.memory_space<vmem>>, vector<8x64xf32>,
    return
  }
  func.func @transform_0(%arg0: i32) -> (i32, i32) {
    %c0_i32 = arith.constant 0 : i32
    %c0_i32_0 = arith.constant 0 : i32
    return %arg0, %c0_i32 : i32, i32
  }
  func.func @transform_1(%arg0: i32) -> (i32, i32) {
    %c0_i32 = arith.constant 0 : i32
    %c0_i32_0 = arith.constant 0 : i32
    %c0_i32_1 = arith.constant 0 : i32
    return %c0_i32, %c0_i32_0 : i32, i32
  }
  func.func @transform_2(%arg0: i32) -> (i32, i32) {
    %c0_i32 = arith.constant 0 : i32
    %c0_i32_0 = arith.constant 0 : i32
    %c0_i32_1 = arith.constant 0 : i32
    return %c0_i32, %c0_i32_0 : i32, i32
  }
  func.func @transform_3(%arg0: i32) -> (i32, i32) {
    %c0_i32 = arith.constant 0 : i32
    %c0_i32_0 = arith.constant 0 : i32
    %c0_i32_1 = arith.constant 0 : i32
    return %c0_i32, %c0_i32_0 : i32, i32
  }
  func.func @transform_4(%arg0: i32) -> (i32, i32) {
    %c0_i32 = arith.constant 0 : i32
    %c0_i32_0 = arith.constant 0 : i32
    %c0_i32_1 = arith.constant 0 : i32
    return %c0_i32, %c0_i32_0 : i32, i32
  }
  func.func @transform_5(%arg0: i32) -> (i32, i32) {
    %c0_i32 = arith.constant 0 : i32
    %c0_i32_0 = arith.constant 0 : i32
    %c0_i32_1 = arith.constant 0 : i32
    return %c0_i32, %c0_i32_0 : i32, i32
  }
  func.func @transform_6(%arg0: i32) -> (i32, i32) {
    %c0_i32 = arith.constant 0 : i32
    %c0_i32_0 = arith.constant 0 : i32
    %c0_i32_1 = arith.constant 0 : i32
    return %c0_i32, %c0_i32_0 : i32, i32
  }
  func.func @transform_7(%arg0: i32) -> (i32, i32) {
    %c0_i32 = arith.constant 0 : i32
    %c0_i32_0 = arith.constant 0 : i32
    return %arg0, %c0_i32 : i32, i32
  }
}

</mosaic_0001>

<bundles_post_ra>
// kernel: tpu_custom_call.1
= control target key start
LH: loop header
LB: loop body
LE: loop exit
PB: predicated region body
PF: predicated region fallthrough
CT: control target
= control target key end

     0   :  { %12 = vsyncpa [#allocation3], 0  ;;  %s790_s0 = inlined_call_operand.hbm [shape: f32[8,32], index: 0, kind: input, shape index: {}]   ;;  %s791_s1 = inlined_call_operand.hbm [shape: bf16[32,128], index: 1, kind: input, shape index: {}]   ;;  %s792_s2 = inlined_call_operand.vmem [shape: f32[1,128], index: 2, kind: input, shape index: {}]   ;;  %s793_s3 = inlined_call_operand.hbm [shape: bf16[32,128], index: 3, kind: input, shape index: {}]   ;;  %s794_s4 = inlined_call_operand.vmem [shape: f32[1,128], index: 4, kind: input, shape index: {}]   ;;  %s795_s5 = inlined_call_operand.hbm [shape: bf16[64,128], index: 5, kind: input, shape index: {}]   ;;  %s796_s6 = inlined_call_operand.vmem [shape: f32[1,128], index: 6, kind: input, shape index: {}]   ;;  %s797_s7 = inlined_call_operand.hbm [shape: f32[8,64], index: 7, kind: output, shape index: {}]  }
   0x1   :  { %13 = vsyncpa [#allocation6], 0 }
   0x2   :  { %14 = vsyncpa [#allocation9], 0  ;;  %s31_s26 = sshll.u32 %s791_s1, 4  ;;  %s32_s26 = int_to_ptr.hbm [resolvable:$true] %s31_s26 }
   0x3   :  { %15 = vsyncpa [#allocation4], 0  ;;  %s666_s27 = smov [#allocation5]   ;;  %s21_s8 = sshll.u32 %s790_s0, 4  ;;  %s22_s8 = int_to_ptr.hbm [resolvable:$true] %s21_s8 }
   0x4   :  { %s33_s28 = sshll.u32 %s666_s27, 4  ;;  %s667_s9 = smov 64   ;;  %s34_s28 = int_to_ptr.vmem [resolvable:$true] %s33_s28 }
   0x5   :  { %s668_s10 = smov 4   ;;  %s669_s11 = smov [#allocation2]  }
   0x6   :  { %39 = dma.hbm_to_vmem [thread:$0]  %s32_s26, 256, %s34_s28, [#allocation6], %s667_s9, %s667_s9, %s668_s10  }
   0x7   :  { %s23_s12 = sshll.u32 %s669_s11, 4  ;;  %s46_s1 = sshll.u32 %s793_s3, 4  ;;  %s24_s12 = int_to_ptr.vmem [resolvable:$true] %s23_s12  ;;  %s47_s1 = int_to_ptr.hbm [resolvable:$true] %s46_s1 }
   0x8   :  { %26 = dma.hbm_to_vmem [thread:$0]  %s22_s8, 128, %s24_s12, [#allocation3]  }
   0x9   :  { %s61_s17 = sshll.u32 %s795_s5, 4  ;;  %s670_s0 = smov [#allocation7]   ;;  %s62_s17 = int_to_ptr.hbm [resolvable:$true] %s61_s17 }
   0xa   :  { %s48_s18 = sshll.u32 %s670_s0, 4  ;;  %s671_s19 = smov [#allocation8]   ;;  %s49_s18 = int_to_ptr.vmem [resolvable:$true] %s48_s18 }
   0xb   :  { %54 = dma.hbm_to_vmem [thread:$0]  %s47_s1, 256, %s49_s18, [#allocation6], %s667_s9, %s667_s9, %s668_s10  }
   0xc   :  { %s63_s20 = sshll.u32 %s671_s19, 4  ;;  %s64_s20 = int_to_ptr.vmem [resolvable:$true] %s63_s20 }
   0xd   :  { %69 = dma.hbm_to_vmem [thread:$0]  %s62_s17, 512, %s64_s20, [#allocation9], %s667_s9, %s667_s9, %s668_s10  }
   0xe   :  { %658 = dma.done.wait [#allocation3], 128  }
   0xf   :  { %659 = vsyncadd [#allocation3], 4294967168 }
  0x10   :  { %660 = dma.done.wait [#allocation6], 512  }
  0x11   :  { %661 = vsyncadd [#allocation6], 4294966784 }
  0x12   :  { %662 = dma.done.wait [#allocation9], 512  }
  0x13   :  { %663 = vsyncadd [#allocation9], 4294966784  ;;  %v487_v0 = vld [vmem:[#allocation5 + $0x8] sm:$0xff]   ;;  %v456_v1 = vld [vmem:[#allocation5] sm:$0xff]   ;;  %vm127_vm0 = vcmask 261120   ;;  %vm226_vm5 = vcmask 523264  }
  0x14   :  { %v462_v2 = vunpack.c.h.bf16 %v487_v0  ;;  %v461_v3 = vunpack.c.l.bf16 %v487_v0  ;;  %v458_v4 = vunpack.c.h.bf16 %v456_v1  ;;  %v457_v5 = vunpack.c.l.bf16 %v456_v1  ;;  %v88_v6 = vld [vmem:[#allocation2] sm:$0xff]  ;;  %v464_v10 = vld [vmem:[#allocation7] sm:$0xff]   ;;  %v489_v46 = vld [vmem:[#allocation8 + $0x8] sm:$0xff]   ;;  %s434_s28 = sshll.u32 %s797_s7, 4  ;;  %s435_s28 = int_to_ptr.hbm [resolvable:$true] %s434_s28 }
  0x15   :  { %v488_v7 = vld [vmem:[#allocation7 + $0x8] sm:$0xff]   ;;  %v466_v11 = vunpack.c.h.bf16 %v464_v10  ;;  %v465_v12 = vunpack.c.l.bf16 %v464_v10  ;;  %v490_v42 = vld [vmem:[#allocation8 + $0x10] sm:$0xff]   ;;  %v478_v48 = vunpack.c.h.bf16 %v489_v46  ;;  %v472_v49 = vld [vmem:[#allocation8] sm:$0xff]   ;;  %v477_v50 = vunpack.c.l.bf16 %v489_v46 }
  0x16   :  { %143 = vmatpush.msra.mxu1 %v462_v2  ;;  %v470_v8 = vunpack.c.h.bf16 %v488_v7  ;;  %v469_v9 = vunpack.c.l.bf16 %v488_v7  ;;  %v501_v13 = vld [vmem:[%s792_s2] ss:$0 sm:$0xff]  ;;  %s672_s2 = smov 96   ;;  %v482_v45 = vunpack.c.h.bf16 %v490_v42  ;;  %v481_v47 = vunpack.c.l.bf16 %v490_v42 }
  0x17   :  { %v744_v17 = vld [vmem:[%s794_s4] ss:$0 sm:$0xff]  ;;  %s673_s4 = smov 32   ;;  %v474_v51 = vunpack.c.h.bf16 %v472_v49  ;;  %v473_v54 = vunpack.c.l.bf16 %v472_v49 }
  0x18   :  { %144 = vmatpush.msra.mxu1 %v461_v3  ;;  %304 = vmatpush.msra.mxu3 %v470_v8  ;;  %v491_v41 = vld [vmem:[#allocation8 + $0x18] sm:$0xff]  }
  0x19   :  { %v486_v43 = vunpack.c.h.bf16 %v491_v41  ;;  %v485_v44 = vunpack.c.l.bf16 %v491_v41  ;;  %v764_v57 = vld [vmem:[%s796_s6] ss:$0 sm:$0xff]  ;;  %s674_s6 = smov [#allocation10]  }
  0x1a   :  { %145 = vmatpush.msra.mxu1 %v458_v4  ;;  %305 = vmatpush.msra.mxu3 %v469_v9  ;;  %s432_s25 = sshll.u32 %s674_s6, 4  ;;  %s433_s25 = int_to_ptr.vmem [resolvable:$true] %s432_s25 }
  0x1b   :  { %238 = vmatpush.msra.mxu2 %v486_v43  ;;  %369 = vmatpush.msra.mxu0 %v486_v43 }
  0x1c   :  { %146 = vmatpush.msra.mxu1 %v457_v5  ;;  %306 = vmatpush.msra.mxu3 %v466_v11 }
  0x1d   :  { %446 = vmatmul.msk.f32.vlgmr.msra.gmra.mxu1 %vm127_vm0, %v88_v6  ;;  %239 = vmatpush.msra.mxu2 %v485_v44 }
  0x1e   :  { %170 = vmatpush.msrb.mxu1 %v470_v8  ;;  %307 = vmatpush.msra.mxu3 %v465_v12 }
  0x1f   :  { %370 = vmatpush.msra.mxu0 %v485_v44  ;;  %240 = vmatpush.msra.mxu2 %v482_v45 }
  0x20   :  { %171 = vmatpush.msrb.mxu1 %v469_v9 }
  0x21   :  { %371 = vmatpush.msra.mxu0 %v482_v45  ;;  %241 = vmatpush.msra.mxu2 %v481_v47 }
  0x22   :  { %172 = vmatpush.msrb.mxu1 %v466_v11 }
  0x23   :  { %372 = vmatpush.msra.mxu0 %v481_v47  ;;  %242 = vmatpush.msra.mxu2 %v478_v48 }
  0x24   :  { %173 = vmatpush.msrb.mxu1 %v465_v12 }
  0x25   :  { %373 = vmatpush.msra.mxu0 %v478_v48  ;;  %243 = vmatpush.msra.mxu2 %v477_v50 }
  0x27   :  { %374 = vmatpush.msra.mxu0 %v477_v50  ;;  %244 = vmatpush.msra.mxu2 %v474_v51 }
  0x29   :  { %375 = vmatpush.msra.mxu0 %v474_v51  ;;  %245 = vmatpush.msra.mxu2 %v473_v54 }
  0x2b   :  { %376 = vmatpush.msra.mxu0 %v473_v54 }
  0x9a   :  { %v148_v14 = vpop.f32.mrf.mxu1 }
  0x9b   :  { %v149_v15 = vadd.f32 %v501_v13, %v148_v14 }
  0x9d   :  { %504 = vtanh.f32 %v149_v15 }
  0xa3   :  { %v737_v16 = vpop.eup %504 }
  0xa4   :  { %447 = vmatmul.msk.f32.vlgmr.msrb.gmra.mxu1 %vm127_vm0, %v737_v16 }
 0x121   :  { %v175_v18 = vpop.f32.mrf.mxu1 }
 0x122   :  { %v176_v19 = vadd.f32 %v744_v17, %v175_v18 }
 0x124   :  { %506 = vtanh.f32 %v176_v19  ;;  %v448_v21 = vmul.f32 -1.442695, %v176_v19 }
 0x126   :  { %508 = vpow2.f32 %v448_v21 }
 0x12a   :  { %v507_v20 = vpop.eup %506 }
 0x12b   :  { %203 = vrot.lane.b32.xlu0 %v507_v20, %s667_s9 }
 0x12c   :  { %v509_v22 = vpop.eup %508 }
 0x12d   :  { %v181_v23 = vadd.f32 1.0, %v509_v22 }
 0x12f   :  { %510 = vrcp.f32 %v181_v23  ;;  %v193_v29 = vand.u32 2147483648, %v181_v23  ;;  %vm187_vm2 = vweird.f32 %v181_v23  ;;  %v191_v30 = vand.u32 2147483647, %v181_v23 }
 0x131   :  { %v194_v32 = vor.u32 1.1754944e-38, %v193_v29  ;;  %vm192_vm4 = vcmp.eq.f32.partialorder %v191_v30, 8.507059e+37 }
 0x133   :  { %198 = vrot.lane.b32.xlu0 %v737_v16, %s672_s2 }
 0x135   :  { %v511_v24 = vpop.eup %510 }
 0x136   :  { %v183_v25 = vmul.f32 %v511_v24, %v181_v23  ;;  %vm188_vm1 = vweird.f32 %v511_v24 }
 0x137   :  { %vm189_vm3 = vmor %vm187_vm2, %vm188_vm1 }
 0x138   :  { %v184_v26 = vsub.f32 1.0, %v183_v25 }
 0x13a   :  { %v185_v27 = vmul.f32 %v511_v24, %v184_v26 }
 0x13c   :  { %v186_v28 = vadd.f32 %v511_v24, %v185_v27 }
 0x13e   :  { %v190_v31 = vsel %vm189_vm3, %v511_v24, %v186_v28 }
 0x13f   :  { %v195_v34 = vsel %vm192_vm4, %v194_v32, %v190_v31 }
 0x19d   :  { %v204_v33 = vpop.permute.xlu0 %203 }
 0x19e   :  { %v206_v35 = vmul.f32 %v204_v33, %v195_v34 }
 0x1a0   :  { %208 = vrot.lane.b32.xlu1 %v206_v35, %s673_s4 }
 0x1a5   :  { %v199_v36 = vpop.permute.xlu0 %198 }
 0x1a6   :  { %v201_v37 = vmul.f32 %v199_v36, %v195_v34 }
 0x212   :  { %v209_v38 = vpop.permute.xlu1 %208 }
 0x213   :  { %v750_v39 = vadd.f32 %v209_v38, %v201_v37 }
 0x215   :  { %512 = vtanh.f32 %v750_v39 }
 0x21b   :  { %v513_v40 = vpop.eup %512 }
 0x21c   :  { %214 = vrot.lane.b32.xlu1 %v513_v40, %s667_s9 }
 0x224   :  { %270 = vrot.lane.b32.xlu1 %v737_v16, %s667_s9 }
 0x28e   :  { %v215_v52 = vpop.permute.xlu1 %214 }
 0x28f   :  { %v217_v53 = vmul.f32 %v215_v52, %v195_v34 }
 0x291   :  { %219 = vrot.lane.b32.xlu2 %v217_v53, %s673_s4 }
 0x296   :  { %v271_v30 = vpop.permute.xlu1 %270 }
 0x2eb   :  { %v220_v55 = vpop.permute.xlu2 %219 }
 0x2ec   :  { %451 = vmatmul.msk.f32.vlgmr.msra.gmra.mxu3 %vm127_vm0, %v220_v55  ;;  %v222_v56 = vsel %vm127_vm0, %v220_v55, %v737_v16 }
 0x2ed   :  { %449 = vmatmul.msk.f32.vlgmr.msra.gmra.mxu2 %vm226_vm5, %v222_v56 }
 0x36f   :  { %v309_v58 = vpop.f32.mrf.mxu3 }
 0x370   :  { %v310_v59 = vadd.f32 %v744_v17, %v309_v58  ;;  %v247_v60 = vpop.f32.mrf.mxu2 }
 0x371   :  { %v248_v61 = vadd.f32 %v764_v57, %v247_v60 }
 0x372   :  { %514 = vtanh.f32 %v310_v59  ;;  %v452_v4 = vmul.f32 -1.442695, %v310_v59 }
 0x373   :  { %516 = vtanh.f32 %v248_v61  ;;  %v450_v0 = vmul.f32 -1.442695, %v248_v61 }
 0x375   :  { %518 = vpow2.f32 %v450_v0 }
 0x378   :  { %v515_v62 = vpop.eup %514 }
 0x379   :  { %v517_v63 = vpop.eup %516  ;;  %334 = vrot.lane.b32.xlu0 %v515_v62, %s667_s9 }
 0x37a   :  { %275 = vrot.lane.b32.xlu2 %v517_v63, %s667_s9 }
 0x37b   :  { %v519_v1 = vpop.eup %518 }
 0x37c   :  { %v253_v2 = vadd.f32 1.0, %v519_v1 }
 0x37e   :  { %520 = vrcp.f32 %v253_v2  ;;  %v265_v11 = vand.u32 2147483648, %v253_v2  ;;  %vm259_vm7 = vweird.f32 %v253_v2  ;;  %v263_v12 = vand.u32 2147483647, %v253_v2 }
 0x37f   :  { %522 = vpow2.f32 %v452_v4 }
 0x380   :  { %v266_v14 = vor.u32 1.1754944e-38, %v265_v11  ;;  %vm264_vm9 = vcmp.eq.f32.partialorder %v263_v12, 8.507059e+37 }
 0x384   :  { %v521_v3 = vpop.eup %520 }
 0x385   :  { %v255_v5 = vmul.f32 %v521_v3, %v253_v2  ;;  %v523_v7 = vpop.eup %522  ;;  %vm260_vm6 = vweird.f32 %v521_v3 }
 0x386   :  { %v315_v9 = vadd.f32 1.0, %v523_v7  ;;  %vm261_vm8 = vmor %vm259_vm7, %vm260_vm6 }
 0x387   :  { %v256_v6 = vsub.f32 1.0, %v255_v5 }
 0x388   :  { %524 = vrcp.f32 %v315_v9  ;;  %v327_v23 = vand.u32 2147483648, %v315_v9  ;;  %vm321_vm11 = vweird.f32 %v315_v9  ;;  %v325_v24 = vand.u32 2147483647, %v315_v9 }
 0x389   :  { %v257_v8 = vmul.f32 %v521_v3, %v256_v6 }
 0x38a   :  { %v328_v26 = vor.u32 1.1754944e-38, %v327_v23  ;;  %vm326_vm13 = vcmp.eq.f32.partialorder %v325_v24, 8.507059e+37 }
 0x38b   :  { %v258_v10 = vadd.f32 %v521_v3, %v257_v8 }
 0x38d   :  { %v262_v13 = vsel %vm261_vm8, %v521_v3, %v258_v10 }
 0x38e   :  { %v267_v16 = vsel %vm264_vm9, %v266_v14, %v262_v13  ;;  %v525_v17 = vpop.eup %524 }
 0x38f   :  { %v317_v19 = vmul.f32 %v525_v17, %v315_v9  ;;  %vm322_vm10 = vweird.f32 %v525_v17  ;;  %v273_v31 = vmul.f32 %v271_v30, %v267_v16 }
 0x390   :  { %vm323_vm12 = vmor %vm321_vm11, %vm322_vm10 }
 0x391   :  { %v318_v20 = vsub.f32 1.0, %v317_v19 }
 0x393   :  { %v319_v21 = vmul.f32 %v525_v17, %v318_v20 }
 0x395   :  { %v320_v22 = vadd.f32 %v525_v17, %v319_v21 }
 0x397   :  { %v324_v25 = vsel %vm323_vm12, %v525_v17, %v320_v22 }
 0x398   :  { %v329_v28 = vsel %vm326_vm13, %v328_v26, %v324_v25 }
 0x399   :  { %v332_v35 = vmul.f32 %v329_v28, %v750_v39 }
 0x3d4   :  { %v276_v15 = vpop.permute.xlu2 %275 }
 0x3d5   :  { %v278_v18 = vmul.f32 %v276_v15, %v267_v16 }
 0x3d7   :  { %280 = vrot.lane.b32.xlu2 %v278_v18, %s673_s4 }
 0x3eb   :  { %v335_v27 = vpop.permute.xlu0 %334 }
 0x3ec   :  { %v337_v29 = vmul.f32 %v335_v27, %v329_v28 }
 0x3ee   :  { %339 = vrot.lane.b32.xlu0 %v337_v29, %s673_s4 }
 0x431   :  { %v281_v32 = vpop.permute.xlu2 %280 }
 0x432   :  { %v283_v33 = vadd.f32 %v281_v32, %v273_v31 }
 0x434   :  { %526 = vtanh.f32 %v283_v33 }
 0x43a   :  { %v527_v34 = vpop.eup %526 }
 0x43b   :  { %286 = vrot.lane.b32.xlu1 %v527_v34, %s667_s9 }
 0x460   :  { %v340_v36 = vpop.permute.xlu0 %339 }
 0x461   :  { %v342_v37 = vadd.f32 %v340_v36, %v332_v35 }
 0x463   :  { %528 = vtanh.f32 %v342_v37 }
 0x469   :  { %v529_v38 = vpop.eup %528 }
 0x46a   :  { %345 = vrot.lane.b32.xlu2 %v529_v38, %s667_s9 }
 0x4ad   :  { %v287_v40 = vpop.permute.xlu1 %286 }
 0x4ae   :  { %v289_v41 = vmul.f32 %v287_v40, %v267_v16 }
 0x4b0   :  { %354 = vrot.lane.b32.xlu1 %v289_v41, %s667_s9 }
 0x4c4   :  { %v346_v42 = vpop.permute.xlu2 %345 }
 0x4c5   :  { %v348_v43 = vmul.f32 %v346_v42, %v329_v28 }
 0x4c7   :  { %350 = vrot.lane.b32.xlu0 %v348_v43, %s673_s4 }
 0x522   :  { %v355_v44 = vpop.permute.xlu1 %354 }
 0x539   :  { %v351_v45 = vpop.permute.xlu0 %350 }
 0x53a   :  { %v357_v46 = vsel %vm127_vm0, %v351_v45, %v355_v44 }
 0x53b   :  { %453 = vmatmul.msk.f32.vlgmr.msra.gmra.mxu0 %vm226_vm5, %v357_v46 }
 0x5b8   :  { %v378_v39 = vpop.f32.mrf.mxu0 }
 0x5b9   :  { %v379_v47 = vadd.f32 %v764_v57, %v378_v39 }
 0x5bb   :  { %530 = vtanh.f32 %v379_v47  ;;  %v454_v49 = vmul.f32 -1.442695, %v379_v47 }
 0x5bd   :  { %532 = vpow2.f32 %v454_v49 }
 0x5c1   :  { %v531_v48 = vpop.eup %530 }
 0x5c2   :  { %403 = vrot.lane.b32.xlu2 %v531_v48, %s667_s9 }
 0x5c3   :  { %v533_v50 = vpop.eup %532 }
 0x5c4   :  { %v384_v51 = vadd.f32 1.0, %v533_v50 }
 0x5c6   :  { %534 = vrcp.f32 %v384_v51  ;;  %v396_v58 = vand.u32 2147483648, %v384_v51  ;;  %vm390_vm15 = vweird.f32 %v384_v51  ;;  %v394_v57 = vand.u32 2147483647, %v384_v51 }
 0x5c8   :  { %v397_v60 = vor.u32 1.1754944e-38, %v396_v58  ;;  %vm395_vm2 = vcmp.eq.f32.partialorder %v394_v57, 8.507059e+37 }
 0x5ca   :  { %418 = vrot.lane.b32.xlu2 %v289_v41, %s673_s4 }
 0x5cc   :  { %v535_v52 = vpop.eup %534 }
 0x5cd   :  { %v386_v53 = vmul.f32 %v535_v52, %v384_v51  ;;  %vm391_vm14 = vweird.f32 %v535_v52 }
 0x5ce   :  { %vm392_vm1 = vmor %vm390_vm15, %vm391_vm14 }
 0x5cf   :  { %v387_v54 = vsub.f32 1.0, %v386_v53 }
 0x5d1   :  { %v388_v55 = vmul.f32 %v535_v52, %v387_v54 }
 0x5d3   :  { %v389_v56 = vadd.f32 %v535_v52, %v388_v55 }
 0x5d5   :  { %v393_v59 = vsel %vm392_vm1, %v535_v52, %v389_v56 }
 0x5d6   :  { %v398_v62 = vsel %vm395_vm2, %v397_v60, %v393_v59 }
 0x5d7   :  { %v401_v0 = vmul.f32 %v398_v62, %v283_v33 }
 0x61c   :  { %v404_v61 = vpop.permute.xlu2 %403 }
 0x61d   :  { %v406_v63 = vmul.f32 %v404_v61, %v398_v62 }
 0x61f   :  { %408 = vrot.lane.b32.xlu0 %v406_v63, %s673_s4 }
 0x624   :  { %v419_v6 = vpop.permute.xlu2 %418 }
 0x691   :  { %v409_v1 = vpop.permute.xlu0 %408 }
 0x692   :  { %v411_v2 = vadd.f32 %v409_v1, %v401_v0 }
 0x694   :  { %536 = vtanh.f32 %v411_v2 }
 0x69a   :  { %v537_v3 = vpop.eup %536 }
 0x69b   :  { %414 = vrot.lane.b32.xlu1 %v537_v3, %s667_s9 }
 0x70d   :  { %v415_v4 = vpop.permute.xlu1 %414 }
 0x70e   :  { %v417_v5 = vmul.f32 %v415_v4, %v398_v62 }
 0x710   :  { %422 = vrot.lane.b32.xlu0 %v417_v5, %s667_s9 }
 0x782   :  { %v423_v7 = vpop.permute.xlu0 %422 }
 0x783   :  { %v425_v8 = vsel %vm127_vm0, %v419_v6, %v423_v7 }
 0x784   :  { %426 = vst.msk [vmem:[#allocation10] sm:$0xff] %vm226_vm5, %v425_v8 }
 0x785   :  { %437 = dma.vmem_to_hbm [thread:$0]  %s433_s25, 128, %s435_s28, [#allocation4]  }
 0x786   :  { %664 = dma.done.wait [#allocation4], 128  }
 0x787   :  { %665 = vsyncadd [#allocation4], 4294967168 }
 0x788   :  { %442 = vsyncpa [#allocation3], 1 }
 0x789   :  { %443 = vsyncpa [#allocation6], 1 }
 0x78a   :  { %444 = vsyncpa [#allocation9], 1 }
 0x78b   :  { %445 = vsyncpa [#allocation4], 1 }

</bundles_post_ra>
